<compile_context>
chip_gen: v7x
topology: tpu7x:2x2x1
jax: 0.10.0
libtpu: 0.0.40
codegen_flags: <defaults>
</compile_context>

<pallas_src>
import jax
import jax.numpy as jnp
from jax.experimental import pallas as pl
from jax.experimental.pallas import tpu as pltpu


# ------------------------------- kernels -----------------------------------


def _kernel_lanes_actions(state_ref, act_ref, ws_ref, wa_ref, b_ref, o_ref):
    """Layout for A >= 128 (lanes = actions).

    state_ref: (TB, Ds)     VMEM, native dtype
    act_ref:   (Da, TB, A)  VMEM, native dtype
    ws_ref:    (1, Ds)      VMEM, f32  (norm-folded state weights)
    wa_ref:    (Da,)        SMEM, f32  (norm-folded action weights)
    b_ref:     (1,)         SMEM, f32  (norm-folded bias)
    o_ref:     (TB, A)      VMEM, f32
    """
    da = act_ref.shape[0]
    s_dot = jnp.sum(state_ref[...].astype(jnp.float32) * ws_ref[...],
                    axis=-1, keepdims=True)                       # (TB, 1)
    acc = jnp.zeros(o_ref.shape, jnp.float32)
    for d in range(da):                                           # Da-step VPU MAC
        acc = acc + act_ref[d].astype(jnp.float32) * wa_ref[d]
    o_ref[...] = acc + s_dot + b_ref[0]


def _kernel_lanes_batch(state_ref, act_ref, ws_ref, wa_ref, b_ref, o_ref):
    """Layout for A < 128 (lanes = batch).

    state_ref: (Ds, TB)     VMEM, native dtype
    act_ref:   (Da, A, TB)  VMEM, native dtype
    ws_ref:    (Ds,)        SMEM, f32
    wa_ref:    (Da,)        SMEM, f32
    b_ref:     (1,)         SMEM, f32
    o_ref:     (A, TB)      VMEM, f32
    """
    ds = state_ref.shape[0]
    da = act_ref.shape[0]
    tb = state_ref.shape[1]
    s_dot = jnp.zeros((1, tb), jnp.float32)
    for e in range(ds):                                           # Ds-step VPU MAC
        s_dot = s_dot + state_ref[pl.ds(e, 1), :].astype(jnp.float32) * ws_ref[e]
    acc = jnp.zeros(o_ref.shape, jnp.float32)
    for d in range(da):                                           # Da-step VPU MAC
        acc = acc + act_ref[d].astype(jnp.float32) * wa_ref[d]
    o_ref[...] = acc + s_dot + b_ref[0]


# ------------------------------ helpers -------------------------------------


def _round_up(x, m):
    return ((x + m - 1) // m) * m


def _vmem_plan():
    """(vmem_limit_bytes, block_byte_budget) sized per TPU generation."""
    cap = 64 * 1024 * 1024                      # safe default (v7x per-TC VMEM)
    try:
        info = pltpu.get_tpu_info()
        cap = int(getattr(info, "vmem_capacity_bytes", cap))
    except Exception:
        pass
    limit = min((cap * 3) // 4, 96 * 1024 * 1024)   # ~48 MiB v7x / 96 MiB v5e,v6e
    return limit, (limit * 2) // 3                  # headroom for compiler scratch


def _choose_tb(batch, per_row_bytes, quantum, budget_bytes):
    """Largest batch tile (multiple of `quantum`) whose double-buffered blocks
    fit the VMEM budget; split into >= 2 grid tiles when possible (v7x 2 TCs)."""
    if batch <= quantum:
        return batch                                   # single full-extent block
    tb = (budget_bytes // max(per_row_bytes, 1)) // quantum * quantum
    tb = max(quantum, min(tb, _round_up(batch, quantum)))
    if tb >= batch:
        tb = max(quantum, _round_up(-(-batch // 2), quantum))
    return tb


def _fold_norm(params, normalize):
    """Fold RunningNorm into the linear weights (fully traced, O(D), f32)."""
    w = jnp.asarray(params["w"], jnp.float32).reshape(-1)
    b = jnp.asarray(params["b"], jnp.float32).reshape(())
    mean = jnp.asarray(params["mean"], jnp.float32).reshape(-1)
    m2 = jnp.asarray(params["M2"], jnp.float32).reshape(-1)
    count = jnp.asarray(params["count"]).astype(jnp.float32)
    eps = jnp.asarray(params["eps"]).astype(jnp.float32)
    if normalize:
        apply_norm = count >= 2.0          # RunningNorm is identity while count < 2
    else:
        apply_norm = jnp.asarray(False)
    inv_std = jnp.where(apply_norm,
                        jax.lax.rsqrt(m2 / jnp.maximum(count, 1.0) + eps),
                        jnp.ones_like(m2))
    mean_eff = jnp.where(apply_norm, mean, jnp.zeros_like(mean))
    w_eff = w * inv_std
    b_eff = b - jnp.sum(mean_eff * w_eff)
    return w_eff, b_eff


def _pallas_forward(state, act, ws, wa, b_eff, B, A, Ds, Da):
    in_bytes = act.dtype.itemsize
    out_bytes = 4
    vmem_limit, block_budget = _vmem_plan()
    # double-buffered input + output block bytes per batch row
    per_row = 2 * ((A * Da + Ds) * in_bytes + A * out_bytes)

    wa_smem = wa.reshape(Da)
    b_smem = b_eff.reshape(1)

    cost = pl.CostEstimate(
        flops=2 * B * (A * Da + Ds) + 2 * B * A,
        transcendentals=0,
        bytes_accessed=B * (A * Da + Ds) * in_bytes + B * A * out_bytes,
    )

    if A >= 128:
        # ---- lanes = actions ------------------------------------------------
        tb = _choose_tb(B, per_row, 8, block_budget)
        grid = (pl.cdiv(B, tb),)
        act_t = jnp.transpose(act, (2, 0, 1))              # (Da, B, A)
        return pl.pallas_call(
            _kernel_lanes_actions,
            out_shape=jax.ShapeDtypeStruct((B, A), jnp.float32),
            grid=grid,
            in_specs=[
                pl.BlockSpec((tb, Ds), lambda i: (i, 0)),
                pl.BlockSpec((Da, tb, A), lambda i: (0, i, 0)),
                pl.BlockSpec((1, Ds), lambda i: (0, 0)),
                pl.BlockSpec(memory_space=pltpu.MemorySpace.SMEM),
                pl.BlockSpec(memory_space=pltpu.MemorySpace.SMEM),
            ],
            out_specs=pl.BlockSpec((tb, A), lambda i: (i, 0)),
            compiler_params=pltpu.CompilerParams(
                dimension_semantics=("parallel",),
                vmem_limit_bytes=vmem_limit),
            cost_estimate=cost,
        )(state, act_t, ws.reshape(1, Ds), wa_smem, b_smem)

    # ---- lanes = batch -------------------------------------------------------
    tb = _choose_tb(B, per_row, 128, block_budget)
    grid = (pl.cdiv(B, tb),)
    act_t = jnp.transpose(act, (2, 1, 0))                  # (Da, A, B)
    state_t = jnp.transpose(state, (1, 0))                 # (Ds, B)
    q_t = pl.pallas_call(
        _kernel_lanes_batch,
        out_shape=jax.ShapeDtypeStruct((A, B), jnp.float32),
        grid=grid,
        in_specs=[
            pl.BlockSpec((Ds, tb), lambda i: (0, i)),
            pl.BlockSpec((Da, A, tb), lambda i: (0, 0, i)),
            pl.BlockSpec(memory_space=pltpu.MemorySpace.SMEM),
            pl.BlockSpec(memory_space=pltpu.MemorySpace.SMEM),
            pl.BlockSpec(memory_space=pltpu.MemorySpace.SMEM),
        ],
        out_specs=pl.BlockSpec((A, tb), lambda i: (0, i)),
        compiler_params=pltpu.CompilerParams(
            dimension_semantics=("parallel",),
            vmem_limit_bytes=vmem_limit),
        cost_estimate=cost,
    )(state_t, act_t, ws.reshape(Ds), wa_smem, b_smem)
    return jnp.transpose(q_t, (1, 0))                      # (B, A)


_FAST_PATH_MAX_ELEMS = 8192   # below this the pallas launch overhead dominates


# ------------------------------ forward -------------------------------------


def linear_network_forward(states, action_space, params, normalize=True):
    """Mirrors LinearNetwork.forward (inference path)."""
    # TODO(synk): training-time RunningNorm.track (buffer update) is not implemented.
    if isinstance(action_space, tuple) and len(action_space) == 3:
        action_features = action_space[0]
    else:
        action_features = action_space
    action_features = jnp.asarray(action_features)

    if isinstance(states, list):
        state = jnp.stack([jnp.asarray(s)[-1] for s in states])
        states_ndim = 3
    else:
        states = jnp.asarray(states)
        states_ndim = states.ndim
        if states_ndim == 3:
            state = states[:, -1, :]
        elif states_ndim == 2:
            state = states[-1][None, :]
            if action_features.ndim == 2:
                action_features = action_features[None]
        else:
            state = states[None, :]
            if action_features.ndim == 2:
                action_features = action_features[None]

    if action_features.ndim == 2:
        # Batched states with a shared 2-D action set: broadcast the shared
        # actions across the batch (the PyTorch module would error here).
        action_features = jnp.broadcast_to(
            action_features[None], (state.shape[0],) + action_features.shape)

    B = state.shape[0]
    A = action_features.shape[1]
    Ds = state.shape[-1]
    Da = action_features.shape[-1]

    if A == 0:
        return jnp.zeros((B, 0), jnp.float32)

    w_eff, b_eff = _fold_norm(params, normalize)
    ws = w_eff[:Ds]
    wa = w_eff[Ds:]

    if B * A * max(Da, 1) < _FAST_PATH_MAX_ELEMS:
        # Sub-vreg problem: a fused XLA einsum beats the kernel launch cost.
        s_dot = state.astype(jnp.float32) @ ws
        a_dot = jnp.einsum("bad,d->ba", action_features.astype(jnp.float32), wa)
        q = a_dot + s_dot[:, None] + b_eff
    else:
        q = _pallas_forward(state, action_features, ws, wa, b_eff, B, A, Ds, Da)

    # Match the PyTorch squeeze behavior for single-trajectory inputs.
    if states_ndim == 2 and action_features.ndim == 3 and action_features.shape[0] == 1:
        q = q[0]
    elif states_ndim == 1:
        q = q[0]
    return q


# ------------------------------- test ---------------------------------------


if __name__ == "__main__":
    key = jax.random.PRNGKey(0)
    k1, k2, k3, k4, k5, k6, k7, k8 = jax.random.split(key, 8)

    state_dim, action_dim = 24, 8
    D = state_dim + action_dim

    bound = 1.0 / float(D) ** 0.5
    params = {
        "w": jax.random.uniform(k1, (D,), minval=-bound, maxval=bound, dtype=jnp.float32),
        "b": jax.random.uniform(k2, (1,), minval=-bound, maxval=bound, dtype=jnp.float32),
        "mean": jax.random.normal(k3, (D,), dtype=jnp.float32) * 0.1,
        "M2": jax.random.uniform(k4, (D,), minval=0.5, maxval=1.5, dtype=jnp.float32) * 10.0,
        "count": jnp.array(10, jnp.int32),
        "eps": jnp.float32(1e-5),
    }

    def reference(states, action_features, params, normalize):
        states = jnp.asarray(states, jnp.float32)
        act = jnp.asarray(action_features, jnp.float32)
        if states.ndim == 3:
            state = states[:, -1, :]
        elif states.ndim == 2:
            state = states[-1][None, :]
            if act.ndim == 2:
                act = act[None]
        else:
            state = states[None, :]
            if act.ndim == 2:
                act = act[None]
        Bb, Aa = state.shape[0], act.shape[1]
        sa = jnp.concatenate(
            [jnp.broadcast_to(state[:, None, :], (Bb, Aa, state.shape[-1])), act], axis=-1)
        if normalize and int(params["count"]) >= 2:
            var = params["M2"] / params["count"].astype(jnp.float32) + params["eps"]
            sa = (sa - params["mean"]) / jnp.sqrt(var)
        return jnp.einsum("bad,d->ba", sa, params["w"]) + params["b"][0]

    fwd = jax.jit(linear_network_forward, static_argnames=("normalize",))

    # --- Pallas path, lanes = batch (A < 128) --------------------------------
    B, T, A = 256, 5, 8
    states = jax.random.normal(k5, (B, T, state_dim), dtype=jnp.float32)
    acts = jax.random.normal(k6, (B, A, action_dim), dtype=jnp.float32)
    q = jax.block_until_ready(fwd(states, acts, params, normalize=True))
    q_ref = reference(states, acts, params, True)
    assert q.shape == (B, A)
    assert jnp.allclose(q, q_ref, atol=1e-4, rtol=1e-4)

    # normalize=False (identity fold)
    q_nn = jax.block_until_ready(fwd(states, acts, params, normalize=False))
    q_nn_ref = reference(states, acts, params, False)
    assert jnp.allclose(q_nn, q_nn_ref, atol=1e-4, rtol=1e-4)

    # bf16 inputs stream natively; kernel accumulates in f32.
    states_bf = states.astype(jnp.bfloat16)
    acts_bf = acts.astype(jnp.bfloat16)
    q_bf = jax.block_until_ready(fwd(states_bf, acts_bf, params, normalize=True))
    q_bf_ref = reference(states_bf, acts_bf, params, True)
    assert jnp.allclose(q_bf, q_bf_ref, atol=5e-3, rtol=5e-3)

    # --- Pallas path, lanes = actions (A >= 128) ------------------------------
    B2, A2 = 8, 256
    states2 = jax.random.normal(k7, (B2, T, state_dim), dtype=jnp.float32)
    acts2 = jax.random.normal(k8, (B2, A2, action_dim), dtype=jnp.float32)
    q2 = jax.block_until_ready(fwd(states2, acts2, params, normalize=True))
    q2_ref = reference(states2, acts2, params, True)
    assert q2.shape == (B2, A2)
    assert jnp.allclose(q2, q2_ref, atol=1e-4, rtol=1e-4)

    # --- Tiny / single-trajectory fast path (2-D states, 2-D actions) --------
    states3 = jax.random.normal(k5, (T, state_dim), dtype=jnp.float32)
    acts3 = jax.random.normal(k6, (A, action_dim), dtype=jnp.float32)
    q3 = jax.block_until_ready(fwd(states3, acts3, params, normalize=True))
    q3_ref = reference(states3, acts3, params, True)[0]
    assert q3.shape == (A,)
    assert jnp.allclose(q3, q3_ref, atol=1e-4, rtol=1e-4)

    print("KERNEL_OK")
</pallas_src>

<mosaic_0001>
module attributes {stable_mosaic.version = 11 : i64} {
  func.func @_kernel_lanes_batch(%arg0: i32, %arg1: memref<24x128xf32, #tpu.memory_space<vmem>>, %arg2: memref<8x8x128xf32, #tpu.memory_space<vmem>>, %arg3: memref<24xf32, #tpu.memory_space<smem>>, %arg4: memref<8xf32, #tpu.memory_space<smem>>, %arg5: memref<1xf32, #tpu.memory_space<smem>>, %arg6: memref<8x128xf32, #tpu.memory_space<vmem>>) attributes {dimension_semantics = [#tpu.dimension_semantics<parallel>], iteration_bounds = array<i64: 2>, scalar_prefetch = 0 : i64, scratch_operands = 0 : i64, tpu.core_type = #tpu.core_type<tc>, window_params = [{transform_indices = @transform_0, window_bounds = array<i64: 24, 128>}, {transform_indices = @transform_1, window_bounds = array<i64: 8, 8, 128>}, {transform_indices = @transform_2, window_bounds = array<i64: 24>}, {transform_indices = @transform_3, window_bounds = array<i64: 8>}, {transform_indices = @transform_4, window_bounds = array<i64: 1>}, {transform_indices = @transform_5, window_bounds = array<i64: 8, 128>}]} {
    %cst = arith.constant 0.000000e+00 : f32
    %0 = vector.broadcast %cst : f32 to vector<1x128xf32>
    %c0 = arith.constant 0 : index
    %c0_0 = arith.constant 0 : index
    %1 = vector.load %arg1[%c0, %c0_0] : memref<24x128xf32, #tpu.memory_space<vmem>>, vector<1x128xf32>
    %c0_1 = arith.constant 0 : index
    %2 = memref.load %arg3[%c0_1] : memref<24xf32, #tpu.memory_space<smem>>
    %3 = vector.broadcast %2 : f32 to vector<1x128xf32>
    %4 = arith.mulf %1, %3 : vector<1x128xf32>
    %5 = arith.addf %0, %4 : vector<1x128xf32>
    %c1 = arith.constant 1 : index
    %c0_2 = arith.constant 0 : index
    %6 = vector.load %arg1[%c1, %c0_2] : memref<24x128xf32, #tpu.memory_space<vmem>>, vector<1x128xf32>
    %c1_3 = arith.constant 1 : index
    %7 = memref.load %arg3[%c1_3] : memref<24xf32, #tpu.memory_space<smem>>
    %8 = vector.broadcast %7 : f32 to vector<1x128xf32>
    %9 = arith.mulf %6, %8 : vector<1x128xf32>
    %10 = arith.addf %5, %9 : vector<1x128xf32>
    %c2 = arith.constant 2 : index
    %c0_4 = arith.constant 0 : index
    %11 = vector.load %arg1[%c2, %c0_4] : memref<24x128xf32, #tpu.memory_space<vmem>>, vector<1x128xf32>
    %c2_5 = arith.constant 2 : index
    %12 = memref.load %arg3[%c2_5] : memref<24xf32, #tpu.memory_space<smem>>
    %13 = vector.broadcast %12 : f32 to vector<1x128xf32>
    %14 = arith.mulf %11, %13 : vector<1x128xf32>
    %15 = arith.addf %10, %14 : vector<1x128xf32>
    %c3 = arith.constant 3 : index
    %c0_6 = arith.constant 0 : index
    %16 = vector.load %arg1[%c3, %c0_6] : memref<24x128xf32, #tpu.memory_space<vmem>>, vector<1x128xf32>
    %c3_7 = arith.constant 3 : index
    %17 = memref.load %arg3[%c3_7] : memref<24xf32, #tpu.memory_space<smem>>
    %18 = vector.broadcast %17 : f32 to vector<1x128xf32>
    %19 = arith.mulf %16, %18 : vector<1x128xf32>
    %20 = arith.addf %15, %19 : vector<1x128xf32>
    %c4 = arith.constant 4 : index
    %c0_8 = arith.constant 0 : index
    %21 = vector.load %arg1[%c4, %c0_8] : memref<24x128xf32, #tpu.memory_space<vmem>>, vector<1x128xf32>
    %c4_9 = arith.constant 4 : index
    %22 = memref.load %arg3[%c4_9] : memref<24xf32, #tpu.memory_space<smem>>
    %23 = vector.broadcast %22 : f32 to vector<1x128xf32>
    %24 = arith.mulf %21, %23 : vector<1x128xf32>
    %25 = arith.addf %20, %24 : vector<1x128xf32>
    %c5 = arith.constant 5 : index
    %c0_10 = arith.constant 0 : index
    %26 = vector.load %arg1[%c5, %c0_10] : memref<24x128xf32, #tpu.memory_space<vmem>>, vector<1x128xf32>
    %c5_11 = arith.constant 5 : index
    %27 = memref.load %arg3[%c5_11] : memref<24xf32, #tpu.memory_space<smem>>
    %28 = vector.broadcast %27 : f32 to vector<1x128xf32>
    %29 = arith.mulf %26, %28 : vector<1x128xf32>
    %30 = arith.addf %25, %29 : vector<1x128xf32>
    %c6 = arith.constant 6 : index
    %c0_12 = arith.constant 0 : index
    %31 = vector.load %arg1[%c6, %c0_12] : memref<24x128xf32, #tpu.memory_space<vmem>>, vector<1x128xf32>
    %c6_13 = arith.constant 6 : index
    %32 = memref.load %arg3[%c6_13] : memref<24xf32, #tpu.memory_space<smem>>
    %33 = vector.broadcast %32 : f32 to vector<1x128xf32>
    %34 = arith.mulf %31, %33 : vector<1x128xf32>
    %35 = arith.addf %30, %34 : vector<1x128xf32>
    %c7 = arith.constant 7 : index
    %c0_14 = arith.constant 0 : index
    %36 = vector.load %arg1[%c7, %c0_14] : memref<24x128xf32, #tpu.memory_space<vmem>>, vector<1x128xf32>
    %c7_15 = arith.constant 7 : index
    %37 = memref.load %arg3[%c7_15] : memref<24xf32, #tpu.memory_space<smem>>
    %38 = vector.broadcast %37 : f32 to vector<1x128xf32>
    %39 = arith.mulf %36, %38 : vector<1x128xf32>
    %40 = arith.addf %35, %39 : vector<1x128xf32>
    %c8 = arith.constant 8 : index
    %c0_16 = arith.constant 0 : index
    %41 = vector.load %arg1[%c8, %c0_16] : memref<24x128xf32, #tpu.memory_space<vmem>>, vector<1x128xf32>
    %c8_17 = arith.constant 8 : index
    %42 = memref.load %arg3[%c8_17] : memref<24xf32, #tpu.memory_space<smem>>
    %43 = vector.broadcast %42 : f32 to vector<1x128xf32>
    %44 = arith.mulf %41, %43 : vector<1x128xf32>
    %45 = arith.addf %40, %44 : vector<1x128xf32>
    %c9 = arith.constant 9 : index
    %c0_18 = arith.constant 0 : index
    %46 = vector.load %arg1[%c9, %c0_18] : memref<24x128xf32, #tpu.memory_space<vmem>>, vector<1x128xf32>
    %c9_19 = arith.constant 9 : index
    %47 = memref.load %arg3[%c9_19] : memref<24xf32, #tpu.memory_space<smem>>
    %48 = vector.broadcast %47 : f32 to vector<1x128xf32>
    %49 = arith.mulf %46, %48 : vector<1x128xf32>
    %50 = arith.addf %45, %49 : vector<1x128xf32>
    %c10 = arith.constant 10 : index
    %c0_20 = arith.constant 0 : index
    %51 = vector.load %arg1[%c10, %c0_20] : memref<24x128xf32, #tpu.memory_space<vmem>>, vector<1x128xf32>
    %c10_21 = arith.constant 10 : index
    %52 = memref.load %arg3[%c10_21] : memref<24xf32, #tpu.memory_space<smem>>
    %53 = vector.broadcast %52 : f32 to vector<1x128xf32>
    %54 = arith.mulf %51, %53 : vector<1x128xf32>
    %55 = arith.addf %50, %54 : vector<1x128xf32>
    %c11 = arith.constant 11 : index
    %c0_22 = arith.constant 0 : index
    %56 = vector.load %arg1[%c11, %c0_22] : memref<24x128xf32, #tpu.memory_space<vmem>>, vector<1x128xf32>
    %c11_23 = arith.constant 11 : index
    %57 = memref.load %arg3[%c11_23] : memref<24xf32, #tpu.memory_space<smem>>
    %58 = vector.broadcast %57 : f32 to vector<1x128xf32>
    %59 = arith.mulf %56, %58 : vector<1x128xf32>
    %60 = arith.addf %55, %59 : vector<1x128xf32>
    %c12 = arith.constant 12 : index
    %c0_24 = arith.constant 0 : index
    %61 = vector.load %arg1[%c12, %c0_24] : memref<24x128xf32, #tpu.memory_space<vmem>>, vector<1x128xf32>
    %c12_25 = arith.constant 12 : index
    %62 = memref.load %arg3[%c12_25] : memref<24xf32, #tpu.memory_space<smem>>
    %63 = vector.broadcast %62 : f32 to vector<1x128xf32>
    %64 = arith.mulf %61, %63 : vector<1x128xf32>
    %65 = arith.addf %60, %64 : vector<1x128xf32>
    %c13 = arith.constant 13 : index
    %c0_26 = arith.constant 0 : index
    %66 = vector.load %arg1[%c13, %c0_26] : memref<24x128xf32, #tpu.memory_space<vmem>>, vector<1x128xf32>
    %c13_27 = arith.constant 13 : index
    %67 = memref.load %arg3[%c13_27] : memref<24xf32, #tpu.memory_space<smem>>
    %68 = vector.broadcast %67 : f32 to vector<1x128xf32>
    %69 = arith.mulf %66, %68 : vector<1x128xf32>
    %70 = arith.addf %65, %69 : vector<1x128xf32>
    %c14 = arith.constant 14 : index
    %c0_28 = arith.constant 0 : index
    %71 = vector.load %arg1[%c14, %c0_28] : memref<24x128xf32, #tpu.memory_space<vmem>>, vector<1x128xf32>
    %c14_29 = arith.constant 14 : index
    %72 = memref.load %arg3[%c14_29] : memref<24xf32, #tpu.memory_space<smem>>
    %73 = vector.broadcast %72 : f32 to vector<1x128xf32>
    %74 = arith.mulf %71, %73 : vector<1x128xf32>
    %75 = arith.addf %70, %74 : vector<1x128xf32>
    %c15 = arith.constant 15 : index
    %c0_30 = arith.constant 0 : index
    %76 = vector.load %arg1[%c15, %c0_30] : memref<24x128xf32, #tpu.memory_space<vmem>>, vector<1x128xf32>
    %c15_31 = arith.constant 15 : index
    %77 = memref.load %arg3[%c15_31] : memref<24xf32, #tpu.memory_space<smem>>
    %78 = vector.broadcast %77 : f32 to vector<1x128xf32>
    %79 = arith.mulf %76, %78 : vector<1x128xf32>
    %80 = arith.addf %75, %79 : vector<1x128xf32>
    %c16 = arith.constant 16 : index
    %c0_32 = arith.constant 0 : index
    %81 = vector.load %arg1[%c16, %c0_32] : memref<24x128xf32, #tpu.memory_space<vmem>>, vector<1x128xf32>
    %c16_33 = arith.constant 16 : index
    %82 = memref.load %arg3[%c16_33] : memref<24xf32, #tpu.memory_space<smem>>
    %83 = vector.broadcast %82 : f32 to vector<1x128xf32>
    %84 = arith.mulf %81, %83 : vector<1x128xf32>
    %85 = arith.addf %80, %84 : vector<1x128xf32>
    %c17 = arith.constant 17 : index
    %c0_34 = arith.constant 0 : index
    %86 = vector.load %arg1[%c17, %c0_34] : memref<24x128xf32, #tpu.memory_space<vmem>>, vector<1x128xf32>
    %c17_35 = arith.constant 17 : index
    %87 = memref.load %arg3[%c17_35] : memref<24xf32, #tpu.memory_space<smem>>
    %88 = vector.broadcast %87 : f32 to vector<1x128xf32>
    %89 = arith.mulf %86, %88 : vector<1x128xf32>
    %90 = arith.addf %85, %89 : vector<1x128xf32>
    %c18 = arith.constant 18 : index
    %c0_36 = arith.constant 0 : index
    %91 = vector.load %arg1[%c18, %c0_36] : memref<24x128xf32, #tpu.memory_space<vmem>>, vector<1x128xf32>
    %c18_37 = arith.constant 18 : index
    %92 = memref.load %arg3[%c18_37] : memref<24xf32, #tpu.memory_space<smem>>
    %93 = vector.broadcast %92 : f32 to vector<1x128xf32>
    %94 = arith.mulf %91, %93 : vector<1x128xf32>
    %95 = arith.addf %90, %94 : vector<1x128xf32>
    %c19 = arith.constant 19 : index
    %c0_38 = arith.constant 0 : index
    %96 = vector.load %arg1[%c19, %c0_38] : memref<24x128xf32, #tpu.memory_space<vmem>>, vector<1x128xf32>
    %c19_39 = arith.constant 19 : index
    %97 = memref.load %arg3[%c19_39] : memref<24xf32, #tpu.memory_space<smem>>
    %98 = vector.broadcast %97 : f32 to vector<1x128xf32>
    %99 = arith.mulf %96, %98 : vector<1x128xf32>
    %100 = arith.addf %95, %99 : vector<1x128xf32>
    %c20 = arith.constant 20 : index
    %c0_40 = arith.constant 0 : index
    %101 = vector.load %arg1[%c20, %c0_40] : memref<24x128xf32, #tpu.memory_space<vmem>>, vector<1x128xf32>
    %c20_41 = arith.constant 20 : index
    %102 = memref.load %arg3[%c20_41] : memref<24xf32, #tpu.memory_space<smem>>
    %103 = vector.broadcast %102 : f32 to vector<1x128xf32>
    %104 = arith.mulf %101, %103 : vector<1x128xf32>
    %105 = arith.addf %100, %104 : vector<1x128xf32>
    %c21 = arith.constant 21 : index
    %c0_42 = arith.constant 0 : index
    %106 = vector.load %arg1[%c21, %c0_42] : memref<24x128xf32, #tpu.memory_space<vmem>>, vector<1x128xf32>
    %c21_43 = arith.constant 21 : index
    %107 = memref.load %arg3[%c21_43] : memref<24xf32, #tpu.memory_space<smem>>
    %108 = vector.broadcast %107 : f32 to vector<1x128xf32>
    %109 = arith.mulf %106, %108 : vector<1x128xf32>
    %110 = arith.addf %105, %109 : vector<1x128xf32>
    %c22 = arith.constant 22 : index
    %c0_44 = arith.constant 0 : index
    %111 = vector.load %arg1[%c22, %c0_44] : memref<24x128xf32, #tpu.memory_space<vmem>>, vector<1x128xf32>
    %c22_45 = arith.constant 22 : index
    %112 = memref.load %arg3[%c22_45] : memref<24xf32, #tpu.memory_space<smem>>
    %113 = vector.broadcast %112 : f32 to vector<1x128xf32>
    %114 = arith.mulf %111, %113 : vector<1x128xf32>
    %115 = arith.addf %110, %114 : vector<1x128xf32>
    %c23 = arith.constant 23 : index
    %c0_46 = arith.constant 0 : index
    %116 = vector.load %arg1[%c23, %c0_46] : memref<24x128xf32, #tpu.memory_space<vmem>>, vector<1x128xf32>
    %c23_47 = arith.constant 23 : index
    %117 = memref.load %arg3[%c23_47] : memref<24xf32, #tpu.memory_space<smem>>
    %118 = vector.broadcast %117 : f32 to vector<1x128xf32>
    %119 = arith.mulf %116, %118 : vector<1x128xf32>
    %120 = arith.addf %115, %119 : vector<1x128xf32>
    %cst_48 = arith.constant 0.000000e+00 : f32
    %121 = vector.broadcast %cst_48 : f32 to vector<8x128xf32>
    %c0_49 = arith.constant 0 : index
    %c0_50 = arith.constant 0 : index
    %c0_51 = arith.constant 0 : index
    %122 = vector.load %arg2[%c0_49, %c0_50, %c0_51] : memref<8x8x128xf32, #tpu.memory_space<vmem>>, vector<1x8x128xf32>
    %123 = vector.shape_cast %122 : vector<1x8x128xf32> to vector<8x128xf32>
    %c0_52 = arith.constant 0 : index
    %124 = memref.load %arg4[%c0_52] : memref<8xf32, #tpu.memory_space<smem>>
    %125 = vector.broadcast %124 : f32 to vector<8x128xf32>
    %126 = arith.mulf %123, %125 : vector<8x128xf32>
    %127 = arith.addf %121, %126 : vector<8x128xf32>
    %c1_53 = arith.constant 1 : index
    %c0_54 = arith.constant 0 : index
    %c0_55 = arith.constant 0 : index
    %128 = vector.load %arg2[%c1_53, %c0_54, %c0_55] : memref<8x8x128xf32, #tpu.memory_space<vmem>>, vector<1x8x128xf32>
    %129 = vector.shape_cast %128 : vector<1x8x128xf32> to vector<8x128xf32>
    %c1_56 = arith.constant 1 : index
    %130 = memref.load %arg4[%c1_56] : memref<8xf32, #tpu.memory_space<smem>>
    %131 = vector.broadcast %130 : f32 to vector<8x128xf32>
    %132 = arith.mulf %129, %131 : vector<8x128xf32>
    %133 = arith.addf %127, %132 : vector<8x128xf32>
    %c2_57 = arith.constant 2 : index
    %c0_58 = arith.constant 0 : index
    %c0_59 = arith.constant 0 : index
    %134 = vector.load %arg2[%c2_57, %c0_58, %c0_59] : memref<8x8x128xf32, #tpu.memory_space<vmem>>, vector<1x8x128xf32>
    %135 = vector.shape_cast %134 : vector<1x8x128xf32> to vector<8x128xf32>
    %c2_60 = arith.constant 2 : index
    %136 = memref.load %arg4[%c2_60] : memref<8xf32, #tpu.memory_space<smem>>
    %137 = vector.broadcast %136 : f32 to vector<8x128xf32>
    %138 = arith.mulf %135, %137 : vector<8x128xf32>
    %139 = arith.addf %133, %138 : vector<8x128xf32>
    %c3_61 = arith.constant 3 : index
    %c0_62 = arith.constant 0 : index
    %c0_63 = arith.constant 0 : index
    %140 = vector.load %arg2[%c3_61, %c0_62, %c0_63] : memref<8x8x128xf32, #tpu.memory_space<vmem>>, vector<1x8x128xf32>
    %141 = vector.shape_cast %140 : vector<1x8x128xf32> to vector<8x128xf32>
    %c3_64 = arith.constant 3 : index
    %142 = memref.load %arg4[%c3_64] : memref<8xf32, #tpu.memory_space<smem>>
    %143 = vector.broadcast %142 : f32 to vector<8x128xf32>
    %144 = arith.mulf %141, %143 : vector<8x128xf32>
    %145 = arith.addf %139, %144 : vector<8x128xf32>
    %c4_65 = arith.constant 4 : index
    %c0_66 = arith.constant 0 : index
    %c0_67 = arith.constant 0 : index
    %146 = vector.load %arg2[%c4_65, %c0_66, %c0_67] : memref<8x8x128xf32, #tpu.memory_space<vmem>>, vector<1x8x128xf32>
    %147 = vector.shape_cast %146 : vector<1x8x128xf32> to vector<8x128xf32>
    %c4_68 = arith.constant 4 : index
    %148 = memref.load %arg4[%c4_68] : memref<8xf32, #tpu.memory_space<smem>>
    %149 = vector.broadcast %148 : f32 to vector<8x128xf32>
    %150 = arith.mulf %147, %149 : vector<8x128xf32>
    %151 = arith.addf %145, %150 : vector<8x128xf32>
    %c5_69 = arith.constant 5 : index
    %c0_70 = arith.constant 0 : index
    %c0_71 = arith.constant 0 : index
    %152 = vector.load %arg2[%c5_69, %c0_70, %c0_71] : memref<8x8x128xf32, #tpu.memory_space<vmem>>, vector<1x8x128xf32>
    %153 = vector.shape_cast %152 : vector<1x8x128xf32> to vector<8x128xf32>
    %c5_72 = arith.constant 5 : index
    %154 = memref.load %arg4[%c5_72] : memref<8xf32, #tpu.memory_space<smem>>
    %155 = vector.broadcast %154 : f32 to vector<8x128xf32>
    %156 = arith.mulf %153, %155 : vector<8x128xf32>
    %157 = arith.addf %151, %156 : vector<8x128xf32>
    %c6_73 = arith.constant 6 : index
    %c0_74 = arith.constant 0 : index
    %c0_75 = arith.constant 0 : index
    %158 = vector.load %arg2[%c6_73, %c0_74, %c0_75] : memref<8x8x128xf32, #tpu.memory_space<vmem>>, vector<1x8x128xf32>
    %159 = vector.shape_cast %158 : vector<1x8x128xf32> to vector<8x128xf32>
    %c6_76 = arith.constant 6 : index
    %160 = memref.load %arg4[%c6_76] : memref<8xf32, #tpu.memory_space<smem>>
    %161 = vector.broadcast %160 : f32 to vector<8x128xf32>
    %162 = arith.mulf %159, %161 : vector<8x128xf32>
    %163 = arith.addf %157, %162 : vector<8x128xf32>
    %c7_77 = arith.constant 7 : index
    %c0_78 = arith.constant 0 : index
    %c0_79 = arith.constant 0 : index
    %164 = vector.load %arg2[%c7_77, %c0_78, %c0_79] : memref<8x8x128xf32, #tpu.memory_space<vmem>>, vector<1x8x128xf32>
    %165 = vector.shape_cast %164 : vector<1x8x128xf32> to vector<8x128xf32>
    %c7_80 = arith.constant 7 : index
    %166 = memref.load %arg4[%c7_80] : memref<8xf32, #tpu.memory_space<smem>>
    %167 = vector.broadcast %166 : f32 to vector<8x128xf32>
    %168 = arith.mulf %165, %167 : vector<8x128xf32>
    %169 = arith.addf %163, %168 : vector<8x128xf32>
    %170 = vector.broadcast %120 : vector<1x128xf32> to vector<8x128xf32>
    %171 = arith.addf %169, %170 : vector<8x128xf32>
    %c0_81 = arith.constant 0 : index
    %172 = memref.load %arg5[%c0_81] : memref<1xf32, #tpu.memory_space<smem>>
    %173 = vector.broadcast %172 : f32 to vector<8x128xf32>
    %174 = arith.addf %171, %173 : vector<8x128xf32>
    %c0_82 = arith.constant 0 : index
    %c0_83 = arith.constant 0 : index
    %175 = vector.load %arg6[%c0_82, %c0_83] : memref<8x128xf32, #tpu.memory_space<vmem>>, vector<8x128xf32>
    tpu.vector_store %arg6[%c0_82, %c0_83], %174 {strides = array<i32>} : memref<8x128xf32, #tpu.memory_space<vmem>>, vector<8x128xf32>,
    return
  }
  func.func @transform_0(%arg0: i32) -> (i32, i32) {
    %c0_i32 = arith.constant 0 : i32
    %c0_i32_0 = arith.constant 0 : i32
    return %c0_i32, %arg0 : i32, i32
  }
  func.func @transform_1(%arg0: i32) -> (i32, i32, i32) {
    %c0_i32 = arith.constant 0 : i32
    %c0_i32_0 = arith.constant 0 : i32
    %c0_i32_1 = arith.constant 0 : i32
    return %c0_i32, %c0_i32_0, %arg0 : i32, i32, i32
  }
  func.func @transform_2(%arg0: i32) -> i32 {
    %c0_i32 = arith.constant 0 : i32
    %c0_i32_0 = arith.constant 0 : i32
    return %c0_i32 : i32
  }
  func.func @transform_3(%arg0: i32) -> i32 {
    %c0_i32 = arith.constant 0 : i32
    %c0_i32_0 = arith.constant 0 : i32
    return %c0_i32 : i32
  }
  func.func @transform_4(%arg0: i32) -> i32 {
    %c0_i32 = arith.constant 0 : i32
    %c0_i32_0 = arith.constant 0 : i32
    return %c0_i32 : i32
  }
  func.func @transform_5(%arg0: i32) -> (i32, i32) {
    %c0_i32 = arith.constant 0 : i32
    %c0_i32_0 = arith.constant 0 : i32
    return %c0_i32, %arg0 : i32, i32
  }
}

</mosaic_0001>

<bundles_post_ra>
// kernel: linear_network_forward.1
= control target key start
LH: loop header
LB: loop body
LE: loop exit
PB: predicated region body
PF: predicated region fallthrough
CT: control target
= control target key end

     0   :  { %s1188_s0 = inlined_call_operand.vmem [shape: f32[24,256], index: 0, kind: input, shape index: {}]   ;;  %s1189_s1 = inlined_call_operand.vmem [shape: f32[8,8,256], index: 1, kind: input, shape index: {}]   ;;  %s1190_s2 = inlined_call_operand.vmem [shape: f32[24], index: 2, kind: input, shape index: {}]   ;;  %s1191_s3 = inlined_call_operand.vmem [shape: f32[8], index: 3, kind: input, shape index: {}]   ;;  %s1192_s4 = inlined_call_operand.<no memory space> [shape: f32[1], index: 4, kind: input, shape index: {}]   ;;  %s1193_s5 = inlined_call_operand.hbm [shape: f32[8,256], index: 5, kind: output, shape index: {}]  }
   0x1   :  { %10 = sst [smem:[#allocation2]] %s1192_s4 }
   0x2   :  { %11 = vsyncpa [#allocation7], 0 }
   0x3   :  { %12 = vsyncpa [#allocation9], 0 }
   0x4   :  { %13 = vsyncpa [#allocation6], 0 }
   0x5   :  { %15 = vsyncpa [#allocation6 + $0x1], 0  ;;  %s924_s20 = smov 0   ;;  %s926_s21 = smov 0  }
   0x6   :  { %s928_s22 = smov 0   ;;  %s930_s23 = smov 0  }
   0x7 LB: > { %s945_s4 = sadd.s32 4294967295, %s886_s23   ;;  %s670_s24 = sadd.s32 4294967294, %s886_s23   ;;  %s886_s23 = sphi %s930_s23, %s1214_s23   ;;  %s882_s22 = sphi %s928_s22, %s1213_s22   ;;  %s878_s21 = sphi %s926_s21, %s1212_s21   ;;  %s874_s20 = sphi %s924_s20, %s1211_s20  }
   0x8   : > { %s949_s25 = sadd.s32 1, %s886_s23   ;;  %s28_s26 = sadd.s32 1, %s882_s22 }
   0x9   : > { %s25_s27 = ssub.s32 %s886_s23, %s949_s25  ;;  %p35_p0 = scmp.ne.s32.totalorder %s882_s22, %s878_s21 }
   0xa   : > { %p26_p1 = scmp.eq.s32.totalorder %s25_s27, 0  ;;  %p36_p2 = scmp.eq.s32.totalorder %s886_s23, 0 }
   0xb   : > { %p154_p3 = scmp.eq.s32.totalorder %s945_s4, 1  ;;  %p159_p4 = scmp.ne.s32.totalorder %s878_s21, %s874_s20 }
   0xc   : > { %s961_s28 = scalar_select %p26_p1, %s882_s22, %s28_s26  }
   0xd   : > { %p963_p5 = por %p36_p2, %p35_p0  ;;  %p967_p6 = por %p154_p3, %p35_p0 }
   0xe   : > { %p160_p7 = scmp.eq.s32.totalorder %s670_s24, 1  ;;  %p671_p8 = scmp.ge.s32.totalorder %s886_s23, 1 }
   0xf   : > { %s1197_s29 = scalar_select %p963_p5, 1, 0 }
  0x10   : > { %s1198_s30 = scalar_select %p967_p6, 1, 0 }
  0x11   : > { %p167_p9 = scmp.lt.s32.totalorder %s886_s23, 3  ;;  %p973_p10 = por %p160_p7, %p159_p4 }
  0x12   : > { %p1194_p11 = scmp.eq.s32.totalorder %s945_s4, 0  ;;  %s180_s10 = sshll.u32 %s1190_s2, 4  ;;  %s181_s10 = int_to_ptr.vmem [resolvable:$true] %s180_s10 }
  0x13   : > { %s1199_s6 = scalar_select %p973_p10, 1, 0 }
  0x14   : > { %p978_p12 = pnand %p671_p8, %p167_p9  ;;  %s191_s13 = sshll.u32 %s1191_s3, 4  ;;  %s192_s13 = int_to_ptr.vmem [resolvable:$true] %s191_s13 }
  0x15   : > { %s786_s15 = scalar_lea.vmem %s181_s10, 16  ;;  %p794_p7 = scmp.lt.s32.totalorder %s181_s10, %s181_s10 }
  0x16   : > { %s1200_s7 = scalar_select %p978_p12, 1, 0 }
  0x17   : > { %p736_p13 = pneg %p978_p12  ;;  %p787_p1 = scmp.ne.s32.totalorder %s181_s10, %s786_s15 }
  0x18   : > { %p795_p8 = scmp.lt.s32.totalorder %s786_s15, %s786_s15 }
  0x19   : > { %p992_p0 = pnand %p1194_p11, %p736_p13 }
  0x1a   : > { %p796_p9 = por %p795_p8, %p794_p7 }
  0x1b   : > { %p788_p2 = pneg %p992_p0 }
  0x1d   : > { %p789_p3 = pnand %p788_p2, %p787_p1 }
  0x1f   : > { %p790_p4 = pneg %p789_p3 }
  0x21   : > { %p797_p10 = pnand %p796_p9, %p790_p4 }
  0x23   : > { %800 = shalt.err (!%p797_p10)
}
  0x24   : > { %s888_s16 = smov [#allocation5]   ;;  %s801_s17 = scalar_lea.vmem %s192_s13, 16 }
  0x25   : > { %739 = dma.vmem_to_smem (!%p992_p0), %s181_s10, 16, %s888_s16, [#allocation7]  }
  0x26   : > { %p802_p13 = scmp.ne.s32.totalorder %s192_s13, %s801_s17  ;;  %p809_p12 = scmp.lt.s32.totalorder %s192_s13, %s192_s13 }
  0x27   : > { %p810_p5 = scmp.lt.s32.totalorder %s801_s17, %s801_s17 }
  0x28   : > { %p804_p11 = pnand %p802_p13, %p788_p2 }
  0x29   : > { %p811_p1 = por %p810_p5, %p809_p12 }
  0x2a   : > { %p805_p6 = pneg %p804_p11 }
  0x2c   : > { %p812_p3 = pnand %p811_p1, %p805_p6 }
  0x2e   : > { %815 = shalt.err (!%p812_p3)
}
  0x2f   : > { %s889_s18 = smov [#allocation8]   ;;  %p674_p10 = scmp.ge.s32.totalorder %s886_s23, 2 }
  0x30   : > { %742 = dma.vmem_to_smem (!%p992_p0), %s192_s13, 16, %s889_s18, [#allocation9]  }
  0x31   : > { %201 = sbr.rel (%p674_p10) target bundleno = 72 (0x48), region = 28  ;;  %p1202_p4 = scmp.ne.s32.totalorder (!%p674_p10), %s1197_s29, 0 }
  0x38   : > { %204 = sbr.rel (!%p1202_p4) target bundleno = 63 (0x3f), region = 32  ;;  %s206_s19 = sand.u32 (%p1202_p4), 1, %s882_s22  }
  0x39   : > { %s675_s24 = sshll.u32 (%p1202_p4), %s886_s23, 3  ;;  %s724_s26 = smul.u32 (%p1202_p4), 24, %s206_s19 }
  0x3a   : > { %s210_s9 = scalar_lea.vmem (%p1202_p4), %s1188_s0, %s675_s24 }
  0x3b   : > { %v242_v0 = vld [vmem:[%s210_s9] sm:$0xff] (%p1202_p4)  ;;  %v244_v1 = vld [vmem:[%s210_s9 + $0x10] sm:$0xff] (%p1202_p4)  ;;  %s208_s10 = scalar_lea.vmem (%p1202_p4), [#allocation3], %s724_s26 }
  0x3c   : > { %v246_v2 = vld [vmem:[%s210_s9 + $0x20] sm:$0xff] (%p1202_p4)  ;;  %243 = vst [vmem:[%s208_s10] sm:$0xff] (%p1202_p4), %v242_v0  ;;  %245 = vst [vmem:[%s208_s10 + $0x8] sm:$0xff] (%p1202_p4), %v244_v1 }
  0x3d   : > { %247 = vst [vmem:[%s208_s10 + $0x10] sm:$0xff] (%p1202_p4), %v246_v2 }
  0x3f PF: > { %p1203_p5 = scmp.ne.s32.totalorder %s1197_s29, 0 }
  0x40   : > { %s255_s11 = sand.u32 (%p1203_p5), 1, %s882_s22   ;;  %s677_s12 = sshll.u32 (%p1203_p5), %s886_s23, 3 }
  0x41   : > { %253 = sbr.rel (!%p1203_p5) target bundleno = 72 (0x48), region = 70  ;;  %s676_s13 = sshll.u32 (%p1203_p5), %s255_s11, 6 }
  0x42   : > { %s259_s16 = scalar_lea.vmem (%p1203_p5), %s1189_s1, %s677_s12  ;;  %s257_s17 = scalar_lea.vmem (%p1203_p5), [#allocation4], %s676_s13 }
  0x43   : > { %v301_v3 = vld [vmem:[%s259_s16] sm:$0xff] (%p1203_p5)  ;;  %v303_v4 = vld [vmem:[%s259_s16 + $0x10] sm:$0xff] (%p1203_p5) }
  0x44   : > { %v305_v5 = vld [vmem:[%s259_s16 + $0x20] sm:$0xff] (%p1203_p5)  ;;  %302 = vst [vmem:[%s257_s17] sm:$0xff] (%p1203_p5), %v301_v3  ;;  %304 = vst [vmem:[%s257_s17 + $0x8] sm:$0xff] (%p1203_p5), %v303_v4  ;;  %v307_v6 = vld [vmem:[%s259_s16 + $0x30] sm:$0xff] (%p1203_p5) }
  0x45   : > { %306 = vst [vmem:[%s257_s17 + $0x10] sm:$0xff] (%p1203_p5), %v305_v5  ;;  %v309_v7 = vld [vmem:[%s259_s16 + $0x40] sm:$0xff] (%p1203_p5)  ;;  %v311_v8 = vld [vmem:[%s259_s16 + $0x50] sm:$0xff] (%p1203_p5)  ;;  %308 = vst [vmem:[%s257_s17 + $0x18] sm:$0xff] (%p1203_p5), %v307_v6 }
  0x46   : > { %310 = vst [vmem:[%s257_s17 + $0x20] sm:$0xff] (%p1203_p5), %v309_v7  ;;  %312 = vst [vmem:[%s257_s17 + $0x28] sm:$0xff] (%p1203_p5), %v311_v8  ;;  %v313_v9 = vld [vmem:[%s259_s16 + $0x60] sm:$0xff] (%p1203_p5)  ;;  %v315_v10 = vld [vmem:[%s259_s16 + $0x70] sm:$0xff] (%p1203_p5) }
  0x47   : > { %314 = vst [vmem:[%s257_s17 + $0x30] sm:$0xff] (%p1203_p5), %v313_v9  ;;  %316 = vst [vmem:[%s257_s17 + $0x38] sm:$0xff] (%p1203_p5), %v315_v10 }
  0x48 PF: > { %p1204_p6 = scmp.ne.s32.totalorder %s1200_s7, 0 }
  0x49   : > { %s1022_s29 = sand.u32 (!%p1204_p6), 1, %s878_s21   ;;  %p1205_p11 = scmp.eq.s32.totalorder (!%p1204_p6), %s945_s4, 0 }
  0x4a   : > { %325 = sbr.rel (%p1204_p6) target bundleno = 163 (0xa3), region = 108  ;;  %s679_s19 = sshll.u32 (!%p1204_p6), %s1022_s29, 6 }
  0x4b   : > { %s725_s18 = smul.u32 (!%p1204_p6), 24, %s1022_s29  ;;  %s1028_s26 = scalar_lea.vmem (!%p1204_p6), [#allocation4], %s679_s19 }
  0x4d   : > { %s1026_s24 = scalar_lea.vmem (!%p1204_p6), [#allocation3], %s725_s18 }
  0x51   : > { %861 = dma.done.wait (%p1205_p11), [#allocation7], 16   ;;  %p1206_p12 = pmov %p1205_p11 }
  0x52   : > { %p1207_p0 = pmov %p1205_p11 }
  0x53   : > { %863 = vsyncadd (%p1206_p12), [#allocation7], 4294967280 }
  0x54   : > { %865 = dma.done.wait (%p1207_p0), [#allocation9], 16   ;;  %p1208_p2 = pmov %p1207_p0 }
  0x56   : > { %867 = vsyncadd (%p1208_p2), [#allocation9], 4294967280 }
  0x57   : > { %349 = sfence }
  0x58   : > { %s376_s7 = sld [smem:[#allocation5]]  ;;  %s683_s27 = sld [smem:[#allocation5 + $0x1]]  ;;  %v375_v11 = vld [vmem:[%s1026_s24] sm:$0x1]  ;;  %v380_v12 = vld [vmem:[%s1026_s24 + $0x1] sm:$0x1] }
  0x59   : > { %s684_s8 = sld [smem:[#allocation5 + $0x2]]  ;;  %s685_s9 = sld [smem:[#allocation5 + $0x3]]  ;;  %v385_v14 = vld [vmem:[%s1026_s24 + $0x2] sm:$0x1]  ;;  %v390_v17 = vld [vmem:[%s1026_s24 + $0x3] sm:$0x1] }
  0x5a   : > { %s686_s10 = sld [smem:[#allocation5 + $0x4]]  ;;  %s687_s11 = sld [smem:[#allocation5 + $0x5]]  ;;  %v395_v22 = vld [vmem:[%s1026_s24 + $0x4] sm:$0x1]  ;;  %v400_v26 = vld [vmem:[%s1026_s24 + $0x5] sm:$0x1] }
  0x5b   : > { %s688_s12 = sld [smem:[#allocation5 + $0x6]]  ;;  %s1042_s13 = sld [smem:[#allocation5 + $0x7]]  ;;  %v405_v30 = vld [vmem:[%s1026_s24 + $0x6] sm:$0x1]  ;;  %v410_v34 = vld [vmem:[%s1026_s24 + $0x7] sm:$0x1] }
  0x5c   : > { %s690_s14 = sld [smem:[#allocation5 + $0x8]]  ;;  %s691_s15 = sld [smem:[#allocation5 + $0x9]]  ;;  %v415_v38 = vld [vmem:[%s1026_s24 + $0x8] sm:$0x1]  ;;  %v420_v42 = vld [vmem:[%s1026_s24 + $0x9] sm:$0x1] }
  0x5d   : > { %s1047_s16 = sld [smem:[#allocation5 + $0xa]]  ;;  %s1051_s17 = sld [smem:[#allocation5 + $0xb]]  ;;  %v425_v46 = vld [vmem:[%s1026_s24 + $0xa] sm:$0x1]  ;;  %v495_v50 = vld [vmem:[%s1028_s26] sm:$0xff]  ;;  %v706_v51 = vld [vmem:[%s1028_s26 + $0x8] sm:$0xff] }
  0x5e   : > { %v377_v13 = vstv %s376_s7  ;;  %v382_v16 = vstv %s683_s27  ;;  %s1053_s18 = sld [smem:[#allocation8]]  ;;  %s1056_s19 = sld [smem:[#allocation5 + $0xc]]  ;;  %v430_v52 = vld [vmem:[%s1026_s24 + $0xb] sm:$0x1]  ;;  %v435_v58 = vld [vmem:[%s1026_s24 + $0xc] sm:$0x1] }
  0x5f   : > { %v378_v15 = vmul.f32 %v377_v13, %v375_v11  ;;  %v383_v18 = vmul.f32 %v382_v16, %v380_v12  ;;  %v387_v19 = vstv %s684_s8  ;;  %v392_v21 = vstv %s685_s9  ;;  %s1058_s7 = sld [smem:[#allocation8 + $0x1]]  ;;  %s1061_s27 = sld [smem:[#allocation5 + $0xd]]  ;;  %v440_v62 = vld [vmem:[%s1026_s24 + $0xd] sm:$0x1]  ;;  %v445_v6 = vld [vmem:[%s1026_s24 + $0xe] sm:$0x1] }
  0x60   : > { %v388_v20 = vmul.f32 %v387_v19, %v385_v14  ;;  %v397_v23 = vstv %s686_s10  ;;  %v393_v25 = vmul.f32 %v392_v21, %v390_v17  ;;  %v402_v27 = vstv %s687_s11  ;;  %s1063_s8 = sld [smem:[#allocation8 + $0x2]]  ;;  %s1067_s9 = sld [smem:[#allocation5 + $0xe]]  ;;  %v708_v2 = vld [vmem:[%s1028_s26 + $0x10] sm:$0xff]  ;;  %v710_v14 = vld [vmem:[%s1028_s26 + $0x18] sm:$0xff] }
  0x61   : > { %v384_v24 = vadd.f32 %v383_v18, %v378_v15  ;;  %v398_v29 = vmul.f32 %v397_v23, %v395_v22  ;;  %v407_v31 = vstv %s688_s12  ;;  %v403_v33 = vmul.f32 %v402_v27, %v400_v26  ;;  %s1073_s10 = sld [smem:[#allocation5 + $0xf]]  ;;  %s1077_s11 = sld [smem:[#allocation8 + $0x3]]  ;;  %v450_v10 = vld [vmem:[%s1026_s24 + $0xf] sm:$0x1]  ;;  %v455_v18 = vld [vmem:[%s1026_s24 + $0x10] sm:$0x1] }
  0x62   : > { %v412_v35 = vstv %s1042_s13  ;;  %v408_v37 = vmul.f32 %v407_v31, %v405_v30  ;;  %v417_v39 = vstv %s690_s14  ;;  %v422_v43 = vstv %s691_s15  ;;  %s1081_s12 = sld [smem:[#allocation5 + $0x10]]  ;;  %s1085_s13 = sld [smem:[#allocation5 + $0x11]]  ;;  %v460_v22 = vld [vmem:[%s1026_s24 + $0x11] sm:$0x1] }
  0x63   : > { %v389_v28 = vadd.f32 %v388_v20, %v384_v24  ;;  %v413_v41 = vmul.f32 %v412_v35, %v410_v34  ;;  %v418_v45 = vmul.f32 %v417_v39, %v415_v38  ;;  %v427_v47 = vstv %s1047_s16  ;;  %s1089_s14 = sld [smem:[#allocation8 + $0x4]]  ;;  %s1093_s15 = sld [smem:[#allocation5 + $0x12]]  ;;  %v712_v26 = vld [vmem:[%s1028_s26 + $0x20] sm:$0xff]  ;;  %v714_v38 = vld [vmem:[%s1028_s26 + $0x28] sm:$0xff] }
  0x64   : > { %v423_v49 = vmul.f32 %v422_v43, %v420_v42  ;;  %v432_v53 = vstv %s1051_s17  ;;  %v497_v54 = vstv %s1053_s18  ;;  %v428_v57 = vmul.f32 %v427_v47, %v425_v46  ;;  %s1097_s16 = sld [smem:[#allocation5 + $0x13]]  ;;  %s1101_s17 = sld [smem:[#allocation8 + $0x5]]  ;;  %v465_v30 = vld [vmem:[%s1026_s24 + $0x12] sm:$0x1]  ;;  %v470_v34 = vld [vmem:[%s1026_s24 + $0x13] sm:$0x1] }
  0x65   : > { %v394_v32 = vadd.f32 %v393_v25, %v389_v28  ;;  %v503_v55 = vstv %s1058_s7  ;;  %v437_v59 = vstv %s1056_s19  ;;  %v433_v61 = vmul.f32 %v432_v53, %v430_v52  ;;  %s1105_s18 = sld [smem:[#allocation5 + $0x14]]  ;;  %s1109_s19 = sld [smem:[#allocation5 + $0x15]]  ;;  %v475_v42 = vld [vmem:[%s1026_s24 + $0x14] sm:$0x1] }
  0x66   : > { %v498_v63 = vmul.f32 %v497_v54, %v495_v50  ;;  %v504_v0 = vmul.f32 %v706_v51, %v503_v55  ;;  %v442_v1 = vstv %s1061_s27  ;;  %v509_v3 = vstv %s1063_s8  ;;  %s1113_s7 = sld [smem:[#allocation8 + $0x6]]  ;;  %s1121_s8 = sld [smem:[#allocation5 + $0x17]]  ;;  %v716_v50 = vld [vmem:[%s1028_s26 + $0x30] sm:$0xff]  ;;  %v485_v55 = vld [vmem:[%s1026_s24 + $0x16] sm:$0x1] }
  0x67   : > { %v399_v36 = vadd.f32 %v398_v29, %v394_v32  ;;  %v438_v5 = vmul.f32 %v437_v59, %v435_v58  ;;  %v447_v7 = vstv %s1067_s9  ;;  %v443_v9 = vmul.f32 %v442_v1, %v440_v62  ;;  %s1117_s27 = sld [smem:[#allocation5 + $0x16]]  ;;  %s1125_s9 = sld [smem:[#allocation8 + $0x7]] }
  0x68   : > { %v505_v11 = vadd.f32 %v504_v0, %v498_v63  ;;  %v510_v12 = vmul.f32 %v708_v2, %v509_v3  ;;  %v452_v13 = vstv %s1073_s10  ;;  %v515_v15 = vstv %s1077_s11  ;;  %v718_v63 = vld [vmem:[%s1028_s26 + $0x38] sm:$0xff]  ;;  %s547_s10 = sld [smem:[#allocation2]]  ;;  %s682_s11 = sshll.u32 %s1022_s29, 3 }
  0x69   : > { %v404_v40 = vadd.f32 %v403_v33, %v399_v36  ;;  %v448_v17 = vmul.f32 %v447_v7, %v445_v6  ;;  %v457_v19 = vstv %s1081_s12  ;;  %v453_v21 = vmul.f32 %v452_v13, %v450_v10  ;;  %s374_s26 = scalar_lea.vmem [#allocation10], %s682_s11  ;;  %p1209_p8 = scmp.ne.s32.totalorder %s1198_s30, 0 }
  0x6a   : > { %v511_v23 = vadd.f32 %v510_v12, %v505_v11  ;;  %v516_v24 = vmul.f32 %v710_v14, %v515_v15  ;;  %v462_v25 = vstv %s1085_s13  ;;  %v521_v27 = vstv %s1089_s14  ;;  %s565_s12 = sshll.u32 %s374_s26, 4  ;;  %s1146_s12 = int_to_ptr.vmem [resolvable:$true] %s565_s12 }
  0x6b   : > { %v409_v44 = vadd.f32 %v408_v37, %v404_v40  ;;  %v458_v29 = vmul.f32 %v457_v19, %v455_v18  ;;  %v467_v31 = vstv %s1093_s15  ;;  %v463_v33 = vmul.f32 %v462_v25, %v460_v22 }
  0x6c   : > { %v517_v35 = vadd.f32 %v516_v24, %v511_v23  ;;  %v522_v36 = vmul.f32 %v712_v26, %v521_v27  ;;  %v472_v37 = vstv %s1097_s16  ;;  %v527_v39 = vstv %s1101_s17  ;;  %s552_s16 = scalar_lea.sflag [#allocation6], %s1022_s29  ;;  %s816_s17 = scalar_lea.vmem %s1146_s12, 128 }
  0x6d   : > { %v414_v48 = vadd.f32 %v413_v41, %v409_v44  ;;  %v468_v41 = vmul.f32 %v467_v31, %v465_v30  ;;  %v477_v43 = vstv %s1105_s18  ;;  %v528_v47 = vmul.f32 %v714_v38, %v527_v39  ;;  %p817_p7 = scmp.ne.s32.totalorder %s1146_s12, %s816_s17 }
  0x6e   : > { %v523_v46 = vadd.f32 %v522_v36, %v517_v35  ;;  %v533_v51 = vstv %s1113_s7  ;;  %v478_v53 = vmul.f32 %v477_v43, %v475_v42  ;;  %v542_v54 = vlaneseq }
  0x6f   : > { %v419_v56 = vadd.f32 %v418_v45, %v414_v48  ;;  %v473_v45 = vmul.f32 %v472_v37, %v470_v34  ;;  %v480_v48 = vld [vmem:[%s1026_s24 + $0x15] sm:$0x1]  ;;  %v492_v62 = vstv %s1121_s8  ;;  %v539_v0 = vstv %s1125_s9  ;;  %p818_p9 = pnand %p817_p7, %p1209_p8 }
  0x70   : > { %v529_v59 = vadd.f32 %v528_v47, %v523_v46  ;;  %v543_v3 = vshrl.u32 %v542_v54, 7  ;;  %v540_v7 = vmul.f32 %v718_v63, %v539_v0  ;;  %v548_v13 = vstv %s547_s10 }
  0x71   : > { %v424_v60 = vadd.f32 %v423_v49, %v419_v56  ;;  %v482_v49 = vstv %s1109_s19  ;;  %v487_v56 = vstv %s1117_s27  ;;  %p819_p13 = pneg %p818_p9 }
  0x72   : > { %v483_v58 = vmul.f32 %v482_v49, %v480_v48  ;;  %v488_v2 = vmul.f32 %v487_v56, %v485_v55 }
  0x73   : > { %v429_v4 = vadd.f32 %v428_v57, %v424_v60  ;;  %v534_v60 = vmul.f32 %v716_v50, %v533_v51 }
  0x75   : > { %v434_v8 = vadd.f32 %v433_v61, %v429_v4  ;;  %v490_v61 = vld [vmem:[%s1026_s24 + $0x17] sm:$0x1]  ;;  %v535_v6 = vadd.f32 %v534_v60, %v529_v59  ;;  %s721_s24 = sshll.u32 %s945_s4, 7  ;;  %s890_s4 = smov [#allocation10]  }
  0x76   : > { %s1144_s15 = scalar_lea.hbm %s1193_s5, %s721_s24  ;;  %s820_s18 = sshll.u32 %s890_s4, 4  ;;  %s821_s18 = int_to_ptr.vmem [resolvable:$false] %s820_s18 }
  0x77   : > { %v439_v16 = vadd.f32 %v438_v5, %v434_v8  ;;  %v493_v5 = vmul.f32 %v492_v62, %v490_v61  ;;  %v541_v11 = vadd.f32 %v540_v7, %v535_v6  ;;  %s822_s19 = scalar_lea.vmem %s821_s18, 256  ;;  %p823_p1 = scmp.lt.s32.totalorder %s1146_s12, %s821_s18 }
  0x78   : > { %p824_p3 = scmp.lt.s32.totalorder %s822_s19, %s816_s17 }
  0x79   : > { %v444_v20 = vadd.f32 %v443_v9, %v439_v16  ;;  %v544_v9 = vsub.s32 0, %v543_v3 }
  0x7a   : > { %p825_p4 = por %p824_p3, %p823_p1 }
  0x7b   : > { %v449_v28 = vadd.f32 %v448_v17, %v444_v20 }
  0x7c   : > { %p826_p5 = pnand %p825_p4, %p819_p13 }
  0x7d   : > { %v454_v32 = vadd.f32 %v453_v21, %v449_v28 }
  0x7f   : > { %v459_v40 = vadd.f32 %v458_v29, %v454_v32 }
  0x81   : > { %v464_v44 = vadd.f32 %v463_v33, %v459_v40 }
  0x83   : > { %v469_v52 = vadd.f32 %v468_v41, %v464_v44 }
  0x85   : > { %v474_v57 = vadd.f32 %v473_v45, %v469_v52 }
  0x87   : > { %v479_v1 = vadd.f32 %v478_v53, %v474_v57 }
  0x89   : > { %v484_v4 = vadd.f32 %v483_v58, %v479_v1 }
  0x8b   : > { %v489_v8 = vadd.f32 %v488_v2, %v484_v4 }
  0x8d   : > { %v494_v10 = vadd.f32 %v493_v5, %v489_v8 }
  0x8f   : > { %v545_v12 = vrot.slane %v494_v10, %v544_v9 }
  0x91   : > { %v546_v14 = vadd.f32 %v545_v12, %v541_v11 }
  0x93   : > { %v549_v15 = vadd.f32 %v548_v13, %v546_v14 }
  0x95   : > { %550 = vst [vmem:[%s374_s26] sm:$0xff] %v549_v15 }
  0x96   : > { %829 = shalt.err (!%p826_p5)
}
  0x97   : > { %s830_s29 = scalar_lea.hbm %s1144_s15, 128  ;;  %s834_s8 = scalar_lea.hbm %s1193_s5, 256 }
  0x98   : > { %p831_p6 = scmp.ne.s32.totalorder %s1144_s15, %s830_s29  ;;  %p835_p0 = scmp.lt.u32.totalorder %s1144_s15, %s1193_s5 }
  0x99   : > { %p836_p2 = scmp.lt.u32.totalorder %s834_s8, %s830_s29  ;;  %p838_p9 = scmp.lt.u32.totalorder %s830_s29, %s1144_s15 }
  0x9a   : > { %p832_p11 = pnand %p831_p6, %p1209_p8 }
  0x9b   : > { %p837_p7 = por %p836_p2, %p835_p0 }
  0x9c   : > { %p833_p12 = pneg %p832_p11 }
  0x9d   : > { %p839_p13 = por %p838_p9, %p837_p7 }
  0x9f   : > { %p840_p1 = pnand %p839_p13, %p833_p12 }
  0xa1   : > { %843 = shalt.err (!%p840_p1)
}
  0xa2   : > { %734 = dma.vmem_to_hbm [thread:$0]  (%p1209_p8), %s1146_s12, 128, %s1144_s15, %s552_s16  }
  0xa3 PF: > { %s577_s11 = sand.u32 1, %s874_s20   ;;  %p1210_p3 = scmp.ne.s32.totalorder %s1199_s6, 0 }
  0xa4   : > { %s578_s24 = scalar_lea.sflag [#allocation6], %s577_s11 }
  0xa5   : > { %p744_p4 = pnand %p674_p10, %p1210_p3 }
  0xa7   : > { %869 = dma.done.wait (!%p744_p4), %s578_s24, 128  }
  0xa8   : > { %871 = vsyncadd (!%p744_p4), %s578_s24, 4294967168  ;;  %p18_p5 = scmp.ge.s32.totalorder %s949_s25, 4   ;;  %s1211_s20 = smov %s878_s21 }
  0xa9   : > { %s1212_s21 = smov %s882_s22  ;;  %s1213_s22 = smov %s961_s28 }
  0xaa   : > { %s1214_s23 = smov %s949_s25  ;;  %20 = sbr.rel (!%p18_p5) target bundleno = 7 (0x7), region = 180 }
  0xb1   :  { %583 = vsyncpa [#allocation6], 1 }
  0xb2   :  { %585 = vsyncpa [#allocation6 + $0x1], 1 }
  0xb3   :  { %586 = vsyncpa [#allocation7], 1 }
  0xb4   :  { %588 = vsyncpa [#allocation7 + $0x1], 1 }
  0xb5   :  { %589 = vsyncpa [#allocation9], 1 }

</bundles_post_ra>
